<compile_context>
chip_gen: v5e
topology: v5e:2x2
jax: 0.10.0
libtpu: 0.0.40
codegen_flags: <defaults>
</compile_context>

<pallas_src>
import functools

import jax
import jax.numpy as jnp
from jax import lax
from jax.experimental import pallas as pl
from jax.experimental.pallas import tpu as pltpu


def _round_up(v, m):
    return ((v + m - 1) // m) * m


def _vmem_capacity_bytes():
    try:
        cap = getattr(pltpu.get_tpu_info(), "vmem_capacity_bytes", None)
        if cap:
            return int(cap)
    except Exception:
        pass
    return 64 * 1024 * 1024        # conservative default (v7x per-core VMEM)


def _is_v5_device():
    try:
        return "v5" in jax.devices()[0].device_kind.lower()
    except Exception:
        return False


def _pool_kernel(x_ref, sum_ref, max_ref, sum_acc, max_acc, *,
                 hw_total, hw_tile, hw_tiles_per_split, n_hw_tiles, max_dtype):
    """Streaming spatial sum/max over NCHW-native (B, C, H*W).

    Grid = (batch_tiles, hw_splits, hw_tiles_per_split); reduction axis last.

    x_ref:    (tb, C, hw_tile)   input tile, H*W on the lane axis
    sum_ref:  (1, tb, C) f32     per-split raw spatial sum
    max_ref:  (1, tb, C) f32     per-split spatial max
    sum_acc:  (tb, C, 128) f32   lane-partial running sum
    max_acc:  (tb, C, 128)       lane-partial running max
    """
    p = pl.program_id(1)
    s = pl.program_id(2)

    @pl.when(s == 0)
    def _init():
        sum_acc[...] = jnp.zeros_like(sum_acc)
        max_acc[...] = jnp.full_like(max_acc, -jnp.inf)

    def accum(n_valid):
        """Accumulate the first `n_valid` (static) lanes of this tile."""
        full = n_valid // 128
        rem = n_valid - full * 128
        for g in range(full):                            # lean hot loop:
            blk = x_ref[:, :, g * 128:(g + 1) * 128]     # load + add + max
            sum_acc[...] += blk.astype(jnp.float32)
            max_acc[...] = jnp.maximum(max_acc[...], blk.astype(max_dtype))
        if rem:
            # Only the single partially-valid 128-lane group gets masked.
            blk = x_ref[:, :, full * 128:(full + 1) * 128]
            lane = lax.broadcasted_iota(jnp.int32, blk.shape, 2)
            keep = lane < rem
            # Select (not multiply): OOB garbage / NaN must not leak in.
            sum_acc[...] += jnp.where(keep, blk.astype(jnp.float32),
                                      jnp.float32(0.0))
            neg = jnp.asarray(-jnp.inf, dtype=max_dtype)
            max_acc[...] = jnp.maximum(
                max_acc[...], jnp.where(keep, blk.astype(max_dtype), neg))

    # Static number of valid lanes in the globally-last H*W tile.
    tail_valid = hw_total - (n_hw_tiles - 1) * hw_tile

    if tail_valid == hw_tile:
        accum(hw_tile)                    # no tile overhangs H*W: never mask
    elif n_hw_tiles == 1:
        accum(tail_valid)                 # single, partially-valid tile
    else:
        is_last = (p * hw_tiles_per_split + s) == (n_hw_tiles - 1)

        @pl.when(jnp.logical_not(is_last))
        def _full_tile():
            accum(hw_tile)

        @pl.when(is_last)                 # mask only the overhanging tile
        def _tail_tile():
            accum(tail_valid)

    @pl.when(s == hw_tiles_per_split - 1)
    def _finalize():
        # One cross-lane (XLU) reduce of the lane partials per output block.
        sum_ref[...] = jnp.sum(sum_acc[...], axis=-1)[None, :, :]
        max_ref[...] = jnp.max(max_acc[...], axis=-1)[None, :, :].astype(
            max_ref.dtype)


def channel_attention(x, w1, w2):
    """x: (B, C, H, W); w1: (C//16, C); w2: (C, C//16). Returns (B, C, 1, 1)."""
    B, C, H, W = x.shape
    HW = H * W
    itemsize = jnp.dtype(x.dtype).itemsize

    # NCHW-native: free reshape, H*W lands on the lane axis.
    x_flat = x.reshape(B, C, HW)

    # Batch tile (output block sublane constraint: tb % 8 == 0 or tb == B).
    tb = 8 if (B % 8 == 0) else B
    n_b = B // tb

    # Max path dtype: max is exact in bf16; keep it packed on v6e/v7x,
    # use f32 on v5e (no bf16 VALU) and for any other input dtype.
    if x.dtype == jnp.bfloat16 and not _is_v5_device():
        max_dtype = jnp.bfloat16
    else:
        max_dtype = jnp.float32
    acc_bytes = tb * C * 128 * (4 + jnp.dtype(max_dtype).itemsize)

    # Chip-aware H*W tile: multiple of 128 lanes, multi-MiB blocks (amortizes
    # the ~0.35 us/step grid overhead), capped at 32 lane-groups so the
    # unrolled inner loop stays small.
    vmem_cap = _vmem_capacity_bytes()
    target = (8 << 20) if vmem_cap >= (100 << 20) else (6 << 20)
    target = max(1 << 20, target - acc_bytes // 2)
    row_bytes = max(1, tb * C * itemsize)
    budget_lanes = max(128, (target // row_bytes) // 128 * 128)
    thw = min(budget_lanes, 32 * 128, _round_up(HW, 128))
    n_hw_tiles = pl.cdiv(HW, thw)

    # Optional split of the H*W reduction into 2 parallel chunks so both v7x
    # TensorCores get work when the batch axis alone has no parallelism.
    n_split = 2 if (n_b == 1 and n_hw_tiles >= 2 and n_hw_tiles % 2 == 0) else 1
    hw_tiles_per_split = n_hw_tiles // n_split

    # Explicit VMEM budget: double-buffered x tiles + accumulators + outputs.
    x_block_bytes = tb * C * thw * itemsize
    out_bytes = 2 * 2 * tb * C * 4
    vmem_limit = 2 * x_block_bytes + acc_bytes + out_bytes + (4 << 20)
    vmem_limit = int(min(max(vmem_limit, 16 << 20), (vmem_cap * 3) // 4))

    cost = pl.CostEstimate(
        flops=2 * B * C * HW,
        transcendentals=0,
        bytes_accessed=B * C * HW * itemsize + 2 * n_split * B * C * 4,
    )

    kernel = functools.partial(
        _pool_kernel, hw_total=HW, hw_tile=thw,
        hw_tiles_per_split=hw_tiles_per_split, n_hw_tiles=n_hw_tiles,
        max_dtype=max_dtype)

    sum_out, max_out = pl.pallas_call(
        kernel,
        out_shape=(jax.ShapeDtypeStruct((n_split, B, C), jnp.float32),
                   jax.ShapeDtypeStruct((n_split, B, C), jnp.float32)),
        grid_spec=pltpu.PrefetchScalarGridSpec(
            num_scalar_prefetch=0,
            grid=(n_b, n_split, hw_tiles_per_split),     # reduction axis last
            in_specs=[
                pl.BlockSpec(
                    (tb, C, thw),
                    lambda b, p, s: (b, 0, p * hw_tiles_per_split + s)),
            ],
            out_specs=[
                pl.BlockSpec((1, tb, C), lambda b, p, s: (p, b, 0)),
                pl.BlockSpec((1, tb, C), lambda b, p, s: (p, b, 0)),
            ],
            scratch_shapes=[
                pltpu.VMEM((tb, C, 128), jnp.float32),   # lane-partial sum
                pltpu.VMEM((tb, C, 128), max_dtype),     # lane-partial max
            ],
        ),
        compiler_params=pltpu.CompilerParams(
            dimension_semantics=("parallel", "parallel", "arbitrary"),
            vmem_limit_bytes=vmem_limit,
        ),
        cost_estimate=cost,
    )(x_flat)

    # Tiny (B, C)-sized epilogue in XLA (per review): combine per-split
    # partials, then the shared-MLP fc + sigmoid.
    sum_bc = jnp.sum(sum_out, axis=0)          # (B, C) raw spatial sum
    max_bc = jnp.max(max_out, axis=0)          # (B, C) spatial max
    avg_bc = sum_bc * jnp.float32(1.0 / HW)

    w1f = w1.astype(jnp.float32)               # (HID, C)
    w2f = w2.astype(jnp.float32)               # (C, HID)

    def fc(v):
        h = jnp.maximum(v @ w1f.T, 0.0)        # ReLU(Conv1x1 C->HID)
        return h @ w2f.T                       # Conv1x1 HID->C

    out = jax.nn.sigmoid(fc(avg_bc) + fc(max_bc))
    return out.reshape(B, C, 1, 1).astype(x.dtype)


def channel_attention_ref(x, w1, w2):
    """Pure-JAX reference matching the PyTorch module."""
    avg = jnp.mean(x.astype(jnp.float32), axis=(2, 3))  # (B, C)
    mx = jnp.max(x.astype(jnp.float32), axis=(2, 3))    # (B, C)

    def fc(v):
        h = jnp.maximum(v @ w1.T.astype(jnp.float32), 0.0)
        return h @ w2.T.astype(jnp.float32)

    out = fc(avg) + fc(mx)
    return jax.nn.sigmoid(out)[:, :, None, None].astype(x.dtype)


if __name__ == "__main__":
    key = jax.random.PRNGKey(0)

    def run_case(B, C, H, W, dtype, tol):
        # in_planes must be >= 16 (module uses in_planes // 16 hidden dim).
        HID = C // 16
        k = jax.random.fold_in(key, B * 100000 + C * 1000 + H)
        kx, k1, k2 = jax.random.split(k, 3)
        x = jax.random.normal(kx, (B, C, H, W), dtype=jnp.float32).astype(dtype)
        # Conv2d(C, C//16, 1, bias=False) weight: (C//16, C, 1, 1) -> (C//16, C)
        w1 = jax.random.normal(k1, (HID, C), dtype=jnp.float32) * 0.1
        # Conv2d(C//16, C, 1, bias=False) weight: (C, C//16, 1, 1) -> (C, C//16)
        w2 = jax.random.normal(k2, (C, HID), dtype=jnp.float32) * 0.1

        out = jax.block_until_ready(channel_attention(x, w1, w2))
        ref = channel_attention_ref(x, w1, w2)
        assert out.shape == (B, C, 1, 1)
        assert jnp.allclose(out.astype(jnp.float32), ref.astype(jnp.float32),
                            atol=tol, rtol=tol), \
            f"mismatch vs reference for ({B},{C},{H},{W},{dtype})"

    # Small case; H*W = 900 exercises the masked-tail (non-multiple-of-128) path.
    run_case(2, 32, 30, 30, jnp.float32, 1e-4)
    # Multi-tile case; exercises the H*W split (>= 2 "parallel" work for v7x).
    run_case(2, 32, 128, 128, jnp.float32, 1e-4)
    # bf16 input; exercises the packed-bf16 max path on v6e/v7x.
    run_case(2, 32, 32, 32, jnp.bfloat16, 2e-2)

    print("KERNEL_OK")
</pallas_src>

<mosaic_0001>
module attributes {stable_mosaic.version = 11 : i64} {
  func.func @_pool_kernel(%arg0: i32, %arg1: i32, %arg2: i32, %arg3: memref<2x32x1024xf32, #tpu.memory_space<vmem>>, %arg4: memref<1x2x32xf32, #tpu.memory_space<vmem>>, %arg5: memref<1x2x32xf32, #tpu.memory_space<vmem>>, %arg6: memref<2x32x128xf32, #tpu.memory_space<vmem>>, %arg7: memref<2x32x128xf32, #tpu.memory_space<vmem>>) attributes {dimension_semantics = [#tpu.dimension_semantics<parallel>, #tpu.dimension_semantics<parallel>, #tpu.dimension_semantics<arbitrary>], iteration_bounds = array<i64: 1, 1, 1>, scalar_prefetch = 0 : i64, scratch_operands = 2 : i64, tpu.core_type = #tpu.core_type<tc>, window_params = [{transform_indices = @transform_0, window_bounds = array<i64: 2, 32, 1024>}, {transform_indices = @transform_1, window_bounds = array<i64: 1, 2, 32>}, {transform_indices = @transform_2, window_bounds = array<i64: 1, 2, 32>}]} {
    %c0_i32 = arith.constant 0 : i32
    %0 = arith.cmpi eq, %arg2, %c0_i32 : i32
    %1 = arith.extui %0 : i1 to i32
    %c0_i32_0 = arith.constant 0 : i32
    %2 = arith.cmpi ne, %1, %c0_i32_0 : i32
    scf.if %2 {
      %cst_116 = arith.constant 0.000000e+00 : f32
      %69 = vector.broadcast %cst_116 : f32 to vector<2x32x128xf32>
      %c0_117 = arith.constant 0 : index
      %c0_118 = arith.constant 0 : index
      %c0_119 = arith.constant 0 : index
      %70 = vector.load %arg6[%c0_117, %c0_118, %c0_119] : memref<2x32x128xf32, #tpu.memory_space<vmem>>, vector<2x32x128xf32>
      tpu.vector_store %arg6[%c0_117, %c0_118, %c0_119], %69 {strides = array<i32>} : memref<2x32x128xf32, #tpu.memory_space<vmem>>, vector<2x32x128xf32>,
      %cst_120 = arith.constant 0xFF800000 : f32
      %71 = vector.broadcast %cst_120 : f32 to vector<2x32x128xf32>
      %c0_121 = arith.constant 0 : index
      %c0_122 = arith.constant 0 : index
      %c0_123 = arith.constant 0 : index
      %72 = vector.load %arg7[%c0_121, %c0_122, %c0_123] : memref<2x32x128xf32, #tpu.memory_space<vmem>>, vector<2x32x128xf32>
      tpu.vector_store %arg7[%c0_121, %c0_122, %c0_123], %71 {strides = array<i32>} : memref<2x32x128xf32, #tpu.memory_space<vmem>>, vector<2x32x128xf32>,
    } else {
    }
    %c0 = arith.constant 0 : index
    %c0_1 = arith.constant 0 : index
    %c0_2 = arith.constant 0 : index
    %3 = vector.load %arg3[%c0, %c0_1, %c0_2] : memref<2x32x1024xf32, #tpu.memory_space<vmem>>, vector<2x32x128xf32>
    %c0_3 = arith.constant 0 : index
    %c0_4 = arith.constant 0 : index
    %c0_5 = arith.constant 0 : index
    %4 = vector.load %arg6[%c0_3, %c0_4, %c0_5] : memref<2x32x128xf32, #tpu.memory_space<vmem>>, vector<2x32x128xf32>
    %5 = arith.addf %4, %3 : vector<2x32x128xf32>
    %c0_6 = arith.constant 0 : index
    %c0_7 = arith.constant 0 : index
    %c0_8 = arith.constant 0 : index
    %6 = vector.load %arg6[%c0_6, %c0_7, %c0_8] : memref<2x32x128xf32, #tpu.memory_space<vmem>>, vector<2x32x128xf32>
    tpu.vector_store %arg6[%c0_6, %c0_7, %c0_8], %5 {strides = array<i32>} : memref<2x32x128xf32, #tpu.memory_space<vmem>>, vector<2x32x128xf32>,
    %c0_9 = arith.constant 0 : index
    %c0_10 = arith.constant 0 : index
    %c0_11 = arith.constant 0 : index
    %7 = vector.load %arg7[%c0_9, %c0_10, %c0_11] : memref<2x32x128xf32, #tpu.memory_space<vmem>>, vector<2x32x128xf32>
    %8 = arith.maximumf %7, %3 : vector<2x32x128xf32>
    %c0_12 = arith.constant 0 : index
    %c0_13 = arith.constant 0 : index
    %c0_14 = arith.constant 0 : index
    %9 = vector.load %arg7[%c0_12, %c0_13, %c0_14] : memref<2x32x128xf32, #tpu.memory_space<vmem>>, vector<2x32x128xf32>
    tpu.vector_store %arg7[%c0_12, %c0_13, %c0_14], %8 {strides = array<i32>} : memref<2x32x128xf32, #tpu.memory_space<vmem>>, vector<2x32x128xf32>,
    %c0_15 = arith.constant 0 : index
    %c0_16 = arith.constant 0 : index
    %c128 = arith.constant 128 : index
    %10 = vector.load %arg3[%c0_15, %c0_16, %c128] : memref<2x32x1024xf32, #tpu.memory_space<vmem>>, vector<2x32x128xf32>
    %c0_17 = arith.constant 0 : index
    %c0_18 = arith.constant 0 : index
    %c0_19 = arith.constant 0 : index
    %11 = vector.load %arg6[%c0_17, %c0_18, %c0_19] : memref<2x32x128xf32, #tpu.memory_space<vmem>>, vector<2x32x128xf32>
    %12 = arith.addf %11, %10 : vector<2x32x128xf32>
    %c0_20 = arith.constant 0 : index
    %c0_21 = arith.constant 0 : index
    %c0_22 = arith.constant 0 : index
    %13 = vector.load %arg6[%c0_20, %c0_21, %c0_22] : memref<2x32x128xf32, #tpu.memory_space<vmem>>, vector<2x32x128xf32>
    tpu.vector_store %arg6[%c0_20, %c0_21, %c0_22], %12 {strides = array<i32>} : memref<2x32x128xf32, #tpu.memory_space<vmem>>, vector<2x32x128xf32>,
    %c0_23 = arith.constant 0 : index
    %c0_24 = arith.constant 0 : index
    %c0_25 = arith.constant 0 : index
    %14 = vector.load %arg7[%c0_23, %c0_24, %c0_25] : memref<2x32x128xf32, #tpu.memory_space<vmem>>, vector<2x32x128xf32>
    %15 = arith.maximumf %14, %10 : vector<2x32x128xf32>
    %c0_26 = arith.constant 0 : index
    %c0_27 = arith.constant 0 : index
    %c0_28 = arith.constant 0 : index
    %16 = vector.load %arg7[%c0_26, %c0_27, %c0_28] : memref<2x32x128xf32, #tpu.memory_space<vmem>>, vector<2x32x128xf32>
    tpu.vector_store %arg7[%c0_26, %c0_27, %c0_28], %15 {strides = array<i32>} : memref<2x32x128xf32, #tpu.memory_space<vmem>>, vector<2x32x128xf32>,
    %c0_29 = arith.constant 0 : index
    %c0_30 = arith.constant 0 : index
    %c256 = arith.constant 256 : index
    %17 = vector.load %arg3[%c0_29, %c0_30, %c256] : memref<2x32x1024xf32, #tpu.memory_space<vmem>>, vector<2x32x128xf32>
    %c0_31 = arith.constant 0 : index
    %c0_32 = arith.constant 0 : index
    %c0_33 = arith.constant 0 : index
    %18 = vector.load %arg6[%c0_31, %c0_32, %c0_33] : memref<2x32x128xf32, #tpu.memory_space<vmem>>, vector<2x32x128xf32>
    %19 = arith.addf %18, %17 : vector<2x32x128xf32>
    %c0_34 = arith.constant 0 : index
    %c0_35 = arith.constant 0 : index
    %c0_36 = arith.constant 0 : index
    %20 = vector.load %arg6[%c0_34, %c0_35, %c0_36] : memref<2x32x128xf32, #tpu.memory_space<vmem>>, vector<2x32x128xf32>
    tpu.vector_store %arg6[%c0_34, %c0_35, %c0_36], %19 {strides = array<i32>} : memref<2x32x128xf32, #tpu.memory_space<vmem>>, vector<2x32x128xf32>,
    %c0_37 = arith.constant 0 : index
    %c0_38 = arith.constant 0 : index
    %c0_39 = arith.constant 0 : index
    %21 = vector.load %arg7[%c0_37, %c0_38, %c0_39] : memref<2x32x128xf32, #tpu.memory_space<vmem>>, vector<2x32x128xf32>
    %22 = arith.maximumf %21, %17 : vector<2x32x128xf32>
    %c0_40 = arith.constant 0 : index
    %c0_41 = arith.constant 0 : index
    %c0_42 = arith.constant 0 : index
    %23 = vector.load %arg7[%c0_40, %c0_41, %c0_42] : memref<2x32x128xf32, #tpu.memory_space<vmem>>, vector<2x32x128xf32>
    tpu.vector_store %arg7[%c0_40, %c0_41, %c0_42], %22 {strides = array<i32>} : memref<2x32x128xf32, #tpu.memory_space<vmem>>, vector<2x32x128xf32>,
    %c0_43 = arith.constant 0 : index
    %c0_44 = arith.constant 0 : index
    %c384 = arith.constant 384 : index
    %24 = vector.load %arg3[%c0_43, %c0_44, %c384] : memref<2x32x1024xf32, #tpu.memory_space<vmem>>, vector<2x32x128xf32>
    %c0_45 = arith.constant 0 : index
    %c0_46 = arith.constant 0 : index
    %c0_47 = arith.constant 0 : index
    %25 = vector.load %arg6[%c0_45, %c0_46, %c0_47] : memref<2x32x128xf32, #tpu.memory_space<vmem>>, vector<2x32x128xf32>
    %26 = arith.addf %25, %24 : vector<2x32x128xf32>
    %c0_48 = arith.constant 0 : index
    %c0_49 = arith.constant 0 : index
    %c0_50 = arith.constant 0 : index
    %27 = vector.load %arg6[%c0_48, %c0_49, %c0_50] : memref<2x32x128xf32, #tpu.memory_space<vmem>>, vector<2x32x128xf32>
    tpu.vector_store %arg6[%c0_48, %c0_49, %c0_50], %26 {strides = array<i32>} : memref<2x32x128xf32, #tpu.memory_space<vmem>>, vector<2x32x128xf32>,
    %c0_51 = arith.constant 0 : index
    %c0_52 = arith.constant 0 : index
    %c0_53 = arith.constant 0 : index
    %28 = vector.load %arg7[%c0_51, %c0_52, %c0_53] : memref<2x32x128xf32, #tpu.memory_space<vmem>>, vector<2x32x128xf32>
    %29 = arith.maximumf %28, %24 : vector<2x32x128xf32>
    %c0_54 = arith.constant 0 : index
    %c0_55 = arith.constant 0 : index
    %c0_56 = arith.constant 0 : index
    %30 = vector.load %arg7[%c0_54, %c0_55, %c0_56] : memref<2x32x128xf32, #tpu.memory_space<vmem>>, vector<2x32x128xf32>
    tpu.vector_store %arg7[%c0_54, %c0_55, %c0_56], %29 {strides = array<i32>} : memref<2x32x128xf32, #tpu.memory_space<vmem>>, vector<2x32x128xf32>,
    %c0_57 = arith.constant 0 : index
    %c0_58 = arith.constant 0 : index
    %c512 = arith.constant 512 : index
    %31 = vector.load %arg3[%c0_57, %c0_58, %c512] : memref<2x32x1024xf32, #tpu.memory_space<vmem>>, vector<2x32x128xf32>
    %c0_59 = arith.constant 0 : index
    %c0_60 = arith.constant 0 : index
    %c0_61 = arith.constant 0 : index
    %32 = vector.load %arg6[%c0_59, %c0_60, %c0_61] : memref<2x32x128xf32, #tpu.memory_space<vmem>>, vector<2x32x128xf32>
    %33 = arith.addf %32, %31 : vector<2x32x128xf32>
    %c0_62 = arith.constant 0 : index
    %c0_63 = arith.constant 0 : index
    %c0_64 = arith.constant 0 : index
    %34 = vector.load %arg6[%c0_62, %c0_63, %c0_64] : memref<2x32x128xf32, #tpu.memory_space<vmem>>, vector<2x32x128xf32>
    tpu.vector_store %arg6[%c0_62, %c0_63, %c0_64], %33 {strides = array<i32>} : memref<2x32x128xf32, #tpu.memory_space<vmem>>, vector<2x32x128xf32>,
    %c0_65 = arith.constant 0 : index
    %c0_66 = arith.constant 0 : index
    %c0_67 = arith.constant 0 : index
    %35 = vector.load %arg7[%c0_65, %c0_66, %c0_67] : memref<2x32x128xf32, #tpu.memory_space<vmem>>, vector<2x32x128xf32>
    %36 = arith.maximumf %35, %31 : vector<2x32x128xf32>
    %c0_68 = arith.constant 0 : index
    %c0_69 = arith.constant 0 : index
    %c0_70 = arith.constant 0 : index
    %37 = vector.load %arg7[%c0_68, %c0_69, %c0_70] : memref<2x32x128xf32, #tpu.memory_space<vmem>>, vector<2x32x128xf32>
    tpu.vector_store %arg7[%c0_68, %c0_69, %c0_70], %36 {strides = array<i32>} : memref<2x32x128xf32, #tpu.memory_space<vmem>>, vector<2x32x128xf32>,
    %c0_71 = arith.constant 0 : index
    %c0_72 = arith.constant 0 : index
    %c640 = arith.constant 640 : index
    %38 = vector.load %arg3[%c0_71, %c0_72, %c640] : memref<2x32x1024xf32, #tpu.memory_space<vmem>>, vector<2x32x128xf32>
    %c0_73 = arith.constant 0 : index
    %c0_74 = arith.constant 0 : index
    %c0_75 = arith.constant 0 : index
    %39 = vector.load %arg6[%c0_73, %c0_74, %c0_75] : memref<2x32x128xf32, #tpu.memory_space<vmem>>, vector<2x32x128xf32>
    %40 = arith.addf %39, %38 : vector<2x32x128xf32>
    %c0_76 = arith.constant 0 : index
    %c0_77 = arith.constant 0 : index
    %c0_78 = arith.constant 0 : index
    %41 = vector.load %arg6[%c0_76, %c0_77, %c0_78] : memref<2x32x128xf32, #tpu.memory_space<vmem>>, vector<2x32x128xf32>
    tpu.vector_store %arg6[%c0_76, %c0_77, %c0_78], %40 {strides = array<i32>} : memref<2x32x128xf32, #tpu.memory_space<vmem>>, vector<2x32x128xf32>,
    %c0_79 = arith.constant 0 : index
    %c0_80 = arith.constant 0 : index
    %c0_81 = arith.constant 0 : index
    %42 = vector.load %arg7[%c0_79, %c0_80, %c0_81] : memref<2x32x128xf32, #tpu.memory_space<vmem>>, vector<2x32x128xf32>
    %43 = arith.maximumf %42, %38 : vector<2x32x128xf32>
    %c0_82 = arith.constant 0 : index
    %c0_83 = arith.constant 0 : index
    %c0_84 = arith.constant 0 : index
    %44 = vector.load %arg7[%c0_82, %c0_83, %c0_84] : memref<2x32x128xf32, #tpu.memory_space<vmem>>, vector<2x32x128xf32>
    tpu.vector_store %arg7[%c0_82, %c0_83, %c0_84], %43 {strides = array<i32>} : memref<2x32x128xf32, #tpu.memory_space<vmem>>, vector<2x32x128xf32>,
    %c0_85 = arith.constant 0 : index
    %c0_86 = arith.constant 0 : index
    %c768 = arith.constant 768 : index
    %45 = vector.load %arg3[%c0_85, %c0_86, %c768] : memref<2x32x1024xf32, #tpu.memory_space<vmem>>, vector<2x32x128xf32>
    %c0_87 = arith.constant 0 : index
    %c0_88 = arith.constant 0 : index
    %c0_89 = arith.constant 0 : index
    %46 = vector.load %arg6[%c0_87, %c0_88, %c0_89] : memref<2x32x128xf32, #tpu.memory_space<vmem>>, vector<2x32x128xf32>
    %47 = arith.addf %46, %45 : vector<2x32x128xf32>
    %c0_90 = arith.constant 0 : index
    %c0_91 = arith.constant 0 : index
    %c0_92 = arith.constant 0 : index
    %48 = vector.load %arg6[%c0_90, %c0_91, %c0_92] : memref<2x32x128xf32, #tpu.memory_space<vmem>>, vector<2x32x128xf32>
    tpu.vector_store %arg6[%c0_90, %c0_91, %c0_92], %47 {strides = array<i32>} : memref<2x32x128xf32, #tpu.memory_space<vmem>>, vector<2x32x128xf32>,
    %c0_93 = arith.constant 0 : index
    %c0_94 = arith.constant 0 : index
    %c0_95 = arith.constant 0 : index
    %49 = vector.load %arg7[%c0_93, %c0_94, %c0_95] : memref<2x32x128xf32, #tpu.memory_space<vmem>>, vector<2x32x128xf32>
    %50 = arith.maximumf %49, %45 : vector<2x32x128xf32>
    %c0_96 = arith.constant 0 : index
    %c0_97 = arith.constant 0 : index
    %c0_98 = arith.constant 0 : index
    %51 = vector.load %arg7[%c0_96, %c0_97, %c0_98] : memref<2x32x128xf32, #tpu.memory_space<vmem>>, vector<2x32x128xf32>
    tpu.vector_store %arg7[%c0_96, %c0_97, %c0_98], %50 {strides = array<i32>} : memref<2x32x128xf32, #tpu.memory_space<vmem>>, vector<2x32x128xf32>,
    %c0_99 = arith.constant 0 : index
    %c0_100 = arith.constant 0 : index
    %c896 = arith.constant 896 : index
    %52 = vector.load %arg3[%c0_99, %c0_100, %c896] : memref<2x32x1024xf32, #tpu.memory_space<vmem>>, vector<2x32x128xf32>
    %53 = tpu.iota {dimensions = array<i32: 2>} : vector<2x32x128xi32>
    %c4_i32 = arith.constant 4 : i32
    %54 = vector.broadcast %c4_i32 : i32 to vector<2x32x128xi32>
    %55 = arith.cmpi slt, %53, %54 : vector<2x32x128xi32>
    %c0_101 = arith.constant 0 : index
    %c0_102 = arith.constant 0 : index
    %c0_103 = arith.constant 0 : index
    %56 = vector.load %arg6[%c0_101, %c0_102, %c0_103] : memref<2x32x128xf32, #tpu.memory_space<vmem>>, vector<2x32x128xf32>
    %cst = arith.constant 0.000000e+00 : f32
    %57 = vector.broadcast %cst : f32 to vector<2x32x128xf32>
    %58 = arith.select %55, %52, %57 : vector<2x32x128xi1>, vector<2x32x128xf32>
    %59 = arith.addf %56, %58 : vector<2x32x128xf32>
    %c0_104 = arith.constant 0 : index
    %c0_105 = arith.constant 0 : index
    %c0_106 = arith.constant 0 : index
    %60 = vector.load %arg6[%c0_104, %c0_105, %c0_106] : memref<2x32x128xf32, #tpu.memory_space<vmem>>, vector<2x32x128xf32>
    tpu.vector_store %arg6[%c0_104, %c0_105, %c0_106], %59 {strides = array<i32>} : memref<2x32x128xf32, #tpu.memory_space<vmem>>, vector<2x32x128xf32>,
    %c0_107 = arith.constant 0 : index
    %c0_108 = arith.constant 0 : index
    %c0_109 = arith.constant 0 : index
    %61 = vector.load %arg7[%c0_107, %c0_108, %c0_109] : memref<2x32x128xf32, #tpu.memory_space<vmem>>, vector<2x32x128xf32>
    %cst_110 = arith.constant 0xFF800000 : f32
    %62 = vector.broadcast %cst_110 : f32 to vector<2x32x128xf32>
    %63 = arith.select %55, %52, %62 : vector<2x32x128xi1>, vector<2x32x128xf32>
    %64 = arith.maximumf %61, %63 : vector<2x32x128xf32>
    %c0_111 = arith.constant 0 : index
    %c0_112 = arith.constant 0 : index
    %c0_113 = arith.constant 0 : index
    %65 = vector.load %arg7[%c0_111, %c0_112, %c0_113] : memref<2x32x128xf32, #tpu.memory_space<vmem>>, vector<2x32x128xf32>
    tpu.vector_store %arg7[%c0_111, %c0_112, %c0_113], %64 {strides = array<i32>} : memref<2x32x128xf32, #tpu.memory_space<vmem>>, vector<2x32x128xf32>,
    %c0_i32_114 = arith.constant 0 : i32
    %66 = arith.cmpi eq, %arg2, %c0_i32_114 : i32
    %67 = arith.extui %66 : i1 to i32
    %c0_i32_115 = arith.constant 0 : i32
    %68 = arith.cmpi ne, %67, %c0_i32_115 : i32
    scf.if %68 {
      %c0_116 = arith.constant 0 : index
      %c0_117 = arith.constant 0 : index
      %c0_118 = arith.constant 0 : index
      %69 = vector.load %arg6[%c0_116, %c0_117, %c0_118] : memref<2x32x128xf32, #tpu.memory_space<vmem>>, vector<2x32x128xf32>
      %cst_119 = arith.constant dense<0.000000e+00> : vector<2x32xf32>
      %70 = vector.multi_reduction <add>, %69, %cst_119 [2] : vector<2x32x128xf32> to vector<2x32xf32>
      %71 = vector.shape_cast %70 : vector<2x32xf32> to vector<1x2x32xf32>
      %c0_120 = arith.constant 0 : index
      %c0_121 = arith.constant 0 : index
      %c0_122 = arith.constant 0 : index
      %72 = vector.load %arg4[%c0_120, %c0_121, %c0_122] : memref<1x2x32xf32, #tpu.memory_space<vmem>>, vector<1x2x32xf32>
      tpu.vector_store %arg4[%c0_120, %c0_121, %c0_122], %71 {strides = array<i32>} : memref<1x2x32xf32, #tpu.memory_space<vmem>>, vector<1x2x32xf32>,
      %c0_123 = arith.constant 0 : index
      %c0_124 = arith.constant 0 : index
      %c0_125 = arith.constant 0 : index
      %73 = vector.load %arg7[%c0_123, %c0_124, %c0_125] : memref<2x32x128xf32, #tpu.memory_space<vmem>>, vector<2x32x128xf32>
      %cst_126 = arith.constant dense<0xFF800000> : vector<2x32xf32>
      %74 = vector.multi_reduction <maximumf>, %73, %cst_126 [2] : vector<2x32x128xf32> to vector<2x32xf32>
      %75 = vector.shape_cast %74 : vector<2x32xf32> to vector<1x2x32xf32>
      %c0_127 = arith.constant 0 : index
      %c0_128 = arith.constant 0 : index
      %c0_129 = arith.constant 0 : index
      %76 = vector.load %arg5[%c0_127, %c0_128, %c0_129] : memref<1x2x32xf32, #tpu.memory_space<vmem>>, vector<1x2x32xf32>
      tpu.vector_store %arg5[%c0_127, %c0_128, %c0_129], %75 {strides = array<i32>} : memref<1x2x32xf32, #tpu.memory_space<vmem>>, vector<1x2x32xf32>,
    } else {
    }
    return
  }
  func.func @transform_0(%arg0: i32, %arg1: i32, %arg2: i32) -> (i32, i32, i32) {
    %c1_i32 = arith.constant 1 : i32
    %0 = arith.muli %arg1, %c1_i32 : i32
    %1 = arith.addi %0, %arg2 : i32
    %c0_i32 = arith.constant 0 : i32
    %c0_i32_0 = arith.constant 0 : i32
    return %arg0, %c0_i32, %1 : i32, i32, i32
  }
  func.func @transform_1(%arg0: i32, %arg1: i32, %arg2: i32) -> (i32, i32, i32) {
    %c0_i32 = arith.constant 0 : i32
    %c0_i32_0 = arith.constant 0 : i32
    return %arg1, %arg0, %c0_i32 : i32, i32, i32
  }
  func.func @transform_2(%arg0: i32, %arg1: i32, %arg2: i32) -> (i32, i32, i32) {
    %c0_i32 = arith.constant 0 : i32
    %c0_i32_0 = arith.constant 0 : i32
    return %arg1, %arg0, %c0_i32 : i32, i32, i32
  }
}

</mosaic_0001>

<bundles_post_ra>
// kernel: tpu_custom_call.1
= control target key start
LH: loop header
LB: loop body
LE: loop exit
PB: predicated region body
PF: predicated region fallthrough
CT: control target
= control target key end

     0   :  { %8 = vsyncpa [#allocation5], 0  ;;  %s852_s0 = inlined_call_operand.hbm [shape: f32[2,32,900], index: 0, kind: input, shape index: {}]   ;;  %s853_s1 = inlined_call_operand.hbm [shape: f32[1,2,32], index: 1, kind: output, shape index: {0}]   ;;  %s854_s2 = inlined_call_operand.hbm [shape: f32[1,2,32], index: 2, kind: output, shape index: {1}]  }
   0x1   :  { %9 = vsyncpa [#allocation6], 0 }
   0x2   :  { %10 = vsyncpa [#allocation9], 0  ;;  %s19_s11 = sshll.u32 %s852_s0, 4  ;;  %s746_s12 = smov [#allocation4]   ;;  %s20_s11 = int_to_ptr.hbm [resolvable:$true] %s19_s11 }
   0x3   :  { %s21_s13 = sshll.u32 %s746_s12, 4  ;;  %s747_s14 = smov 1024   ;;  %s22_s13 = int_to_ptr.vmem [resolvable:$true] %s21_s13 }
   0x4   :  { %s748_s15 = smov 64  }
   0x5   :  { %27 = dma.hbm_to_vmem [thread:$0]  %s20_s11, 8192, %s22_s13, [#allocation5], %s747_s14, %s747_s14, %s748_s15  }
   0x6   :  { %740 = dma.done.wait [#allocation5], 8192  }
   0x7   :  { %741 = vsyncadd [#allocation5], 4294959104  ;;  %v454_v0 = vlaneseq  ;;  %v58_v1 = vld [vmem:[#allocation4 + $0x100] sm:$0xff]  ;;  %v114_v2 = vld [vmem:[#allocation4 + $0x108] sm:$0xff]  ;;  %vm559_vm1 = vcmask 130112   ;;  %vm567_vm2 = vcmask 261312  }
   0x8   :  { %v170_v3 = vld [vmem:[#allocation4 + $0x110] sm:$0xff]  ;;  %v130_v4 = vadd.f32 %v114_v2, %v58_v1  ;;  %v154_v6 = vmax.f32 %v58_v1, %v114_v2  ;;  %v226_v7 = vld [vmem:[#allocation4 + $0x118] sm:$0xff]  ;;  %v54_v8 = vld [vmem:[#allocation4] sm:$0xff]  ;;  %vm563_vm3 = vcmask 195712   ;;  %s749_s0 = smov [#allocation7]   ;;  %s637_s19 = sshll.u32 %s853_s1, 4  ;;  %s638_s19 = int_to_ptr.hbm [resolvable:$true] %s637_s19 }
   0x9   :  { %v769_v5 = vand.u32 127, %v454_v0  ;;  %v110_v10 = vld [vmem:[#allocation4 + $0x8] sm:$0xff]  ;;  %v166_v11 = vld [vmem:[#allocation4 + $0x10] sm:$0xff]  ;;  %v282_v12 = vld [vmem:[#allocation4 + $0x120] sm:$0xff]  ;;  %s635_s16 = sshll.u32 %s749_s0, 4  ;;  %vm576_vm4 = vcmask 1041409   ;;  %s636_s16 = int_to_ptr.vmem [resolvable:$true] %s635_s16 }
   0xa   :  { %v186_v9 = vadd.f32 %v170_v3, %v130_v4  ;;  %v771_v13 = vld [vmem:[#allocation4 + $0x138] sm:$0xff]  ;;  %v150_v14 = vmax.f32 %v54_v8, %v110_v10  ;;  %v126_v15 = vadd.f32 %v110_v10, %v54_v8  ;;  %v210_v16 = vmax.f32 %v154_v6, %v170_v3  ;;  %v59_v19 = vld [vmem:[#allocation4 + $0x140] sm:$0xff]  ;;  %v115_v20 = vld [vmem:[#allocation4 + $0x148] sm:$0xff]  ;;  %s750_s1 = smov [#allocation8]   ;;  %s648_s23 = sshll.u32 %s854_s2, 4  ;;  %s649_s23 = int_to_ptr.hbm [resolvable:$true] %s648_s23 }
   0xb   :  { %vm456_vm0 = vcmp.lt.s32.totalorder %v769_v5, 4  ;;  %v222_v18 = vld [vmem:[#allocation4 + $0x18] sm:$0xff]  ;;  %v774_v21 = vld [vmem:[#allocation4 + $0x128] sm:$0xff]  ;;  %v776_v22 = vld [vmem:[#allocation4 + $0x130] sm:$0xff]  ;;  %v131_v29 = vadd.f32 %v115_v20, %v59_v19  ;;  %v155_v31 = vmax.f32 %v59_v19, %v115_v20  ;;  %vm579_vm5 = vcmask 254976   ;;  %s646_s20 = sshll.u32 %s750_s1, 4  ;;  %s647_s20 = int_to_ptr.vmem [resolvable:$true] %s646_s20 }
   0xc   :  { %v242_v17 = vadd.f32 %v226_v7, %v186_v9  ;;  %v206_v23 = vmax.f32 %v150_v14, %v166_v11  ;;  %v182_v24 = vadd.f32 %v166_v11, %v126_v15  ;;  %v171_v25 = vld [vmem:[#allocation4 + $0x150] sm:$0xff]  ;;  %v278_v27 = vld [vmem:[#allocation4 + $0x20] sm:$0xff]  ;;  %v446_v28 = vld [vmem:[#allocation4 + $0x38] sm:$0xff]  ;;  %v469_v32 = vsel %vm456_vm0, %v771_v13, 0.0 }
   0xd   :  { %v227_v30 = vld [vmem:[#allocation4 + $0x158] sm:$0xff]  ;;  %v55_v35 = vld [vmem:[#allocation4 + $0x40] sm:$0xff]  ;;  %v111_v36 = vld [vmem:[#allocation4 + $0x48] sm:$0xff]  ;;  %v266_v38 = vmax.f32 %v210_v16, %v226_v7  ;;  %v187_v41 = vadd.f32 %v171_v25, %v131_v29  ;;  %v497_v45 = vsel %vm456_vm0, %v446_v28, -inf  ;;  %v211_v49 = vmax.f32 %v155_v31, %v171_v25 }
   0xe   :  { %v298_v26 = vadd.f32 %v282_v12, %v242_v17  ;;  %v262_v33 = vmax.f32 %v206_v23, %v222_v18  ;;  %v238_v34 = vadd.f32 %v222_v18, %v182_v24  ;;  %v167_v37 = vld [vmem:[#allocation4 + $0x50] sm:$0xff]  ;;  %v334_v40 = vld [vmem:[#allocation4 + $0x28] sm:$0xff]  ;;  %v151_v42 = vmax.f32 %v55_v35, %v111_v36  ;;  %v283_v47 = vld [vmem:[#allocation4 + $0x160] sm:$0xff] }
   0xf   :  { %v127_v43 = vadd.f32 %v111_v36, %v55_v35  ;;  %v223_v48 = vld [vmem:[#allocation4 + $0x58] sm:$0xff]  ;;  %v390_v51 = vld [vmem:[#allocation4 + $0x30] sm:$0xff]  ;;  %v465_v52 = vsel %vm456_vm0, %v446_v28, 0.0  ;;  %v243_v53 = vadd.f32 %v227_v30, %v187_v41  ;;  %v56_v55 = vld [vmem:[#allocation4 + $0x80] sm:$0xff]  ;;  %v787_v63 = vmax.f32 %v266_v38, %v282_v12 }
  0x10   :  { %v354_v39 = vadd.f32 %v774_v21, %v298_v26  ;;  %v318_v44 = vmax.f32 %v262_v33, %v278_v27  ;;  %v294_v46 = vadd.f32 %v278_v27, %v238_v34  ;;  %v207_v54 = vmax.f32 %v151_v42, %v167_v37  ;;  %v112_v56 = vld [vmem:[#allocation4 + $0x88] sm:$0xff]  ;;  %v451_v60 = vld [vmem:[#allocation4 + $0x178] sm:$0xff]  ;;  %v279_v61 = vld [vmem:[#allocation4 + $0x60] sm:$0xff] }
  0x11   :  { %v339_v59 = vld [vmem:[#allocation4 + $0x168] sm:$0xff]  ;;  %v183_v62 = vadd.f32 %v167_v37, %v127_v43  ;;  %v299_v1 = vadd.f32 %v283_v47, %v243_v53  ;;  %v267_v3 = vmax.f32 %v211_v49, %v227_v30  ;;  %v168_v4 = vld [vmem:[#allocation4 + $0x90] sm:$0xff]  ;;  %v128_v11 = vadd.f32 %v112_v56, %v56_v55  ;;  %v447_v17 = vld [vmem:[#allocation4 + $0x78] sm:$0xff] }
  0x12   :  { %v410_v50 = vadd.f32 %v776_v22, %v354_v39  ;;  %v374_v57 = vmax.f32 %v318_v44, %v334_v40  ;;  %v350_v58 = vadd.f32 %v334_v40, %v294_v46  ;;  %v263_v2 = vmax.f32 %v207_v54, %v223_v48  ;;  %v395_v8 = vld [vmem:[#allocation4 + $0x170] sm:$0xff]  ;;  %v335_v9 = vld [vmem:[#allocation4 + $0x68] sm:$0xff]  ;;  %v224_v18 = vld [vmem:[#allocation4 + $0x98] sm:$0xff] }
  0x13   :  { %v239_v10 = vadd.f32 %v223_v48, %v183_v62  ;;  %v355_v14 = vadd.f32 %v339_v59, %v299_v1  ;;  %v470_v15 = vsel %vm456_vm0, %v451_v60, 0.0  ;;  %v323_v12 = vmax.f32 %v267_v3, %v283_v47  ;;  %v391_v23 = vld [vmem:[#allocation4 + $0x70] sm:$0xff]  ;;  %v280_v29 = vld [vmem:[#allocation4 + $0xa0] sm:$0xff]  ;;  %v116_v31 = vld [vmem:[#allocation4 + $0x188] sm:$0xff] }
  0x14   :  { %v477_v0 = vadd.f32 %v469_v32, %v410_v50  ;;  %v430_v6 = vmax.f32 %v374_v57, %v390_v51  ;;  %v406_v7 = vadd.f32 %v390_v51, %v350_v58  ;;  %v319_v16 = vmax.f32 %v263_v2, %v279_v61  ;;  %v60_v30 = vld [vmem:[#allocation4 + $0x180] sm:$0xff]  ;;  %v336_v39 = vld [vmem:[#allocation4 + $0xa8] sm:$0xff]  ;;  %v172_v41 = vld [vmem:[#allocation4 + $0x190] sm:$0xff] }
  0x15   :  { %v295_v24 = vadd.f32 %v279_v61, %v239_v10  ;;  %v184_v25 = vadd.f32 %v168_v4, %v128_v11  ;;  %v411_v26 = vadd.f32 %v395_v8, %v355_v14  ;;  %v379_v28 = vmax.f32 %v323_v12, %v339_v59  ;;  %v61_v46 = vld [vmem:[#allocation4 + $0x1c0] sm:$0xff]  ;;  %v117_v47 = vld [vmem:[#allocation4 + $0x1c8] sm:$0xff]  ;;  %v228_v51 = vld [vmem:[#allocation4 + $0x198] sm:$0xff] }
  0x16   :  { %540 = vadd.xlane.f32.xlu1 %v477_v0  ;;  %v505_v19 = vmax.f32 %v430_v6, %v497_v45  ;;  %v473_v20 = vadd.f32 %v465_v52, %v406_v7  ;;  %v375_v27 = vmax.f32 %v319_v16, %v335_v9  ;;  %v498_v32 = vsel %vm456_vm0, %v447_v17, -inf  ;;  %v57_v53 = vld [vmem:[#allocation4 + $0xc0] sm:$0xff]  ;;  %v113_v54 = vld [vmem:[#allocation4 + $0xc8] sm:$0xff]  ;;  %v173_v58 = vld [vmem:[#allocation4 + $0x1d0] sm:$0xff] }
  0x17   :  { %v351_v33 = vadd.f32 %v335_v9, %v295_v24  ;;  %v240_v34 = vadd.f32 %v224_v18, %v184_v25  ;;  %v152_v35 = vmax.f32 %v56_v55, %v112_v56  ;;  %v478_v36 = vadd.f32 %v470_v15, %v411_v26  ;;  %v392_v59 = vld [vmem:[#allocation4 + $0xb0] sm:$0xff]  ;;  %v448_v61 = vld [vmem:[#allocation4 + $0xb8] sm:$0xff] }
  0x18   :  { %589 = vmax.xlane.f32.xlu2 %v505_v19  ;;  %532 = vadd.xlane.f32.xlu0 %v473_v20  ;;  %v431_v37 = vmax.f32 %v375_v27, %v391_v23  ;;  %v466_v38 = vsel %vm456_vm0, %v447_v17, 0.0  ;;  %v378_v40 = vmax.f32 %v787_v63, %v774_v21  ;;  %v156_v45 = vmax.f32 %v60_v30, %v116_v31  ;;  %v284_v63 = vld [vmem:[#allocation4 + $0x1a0] sm:$0xff]  ;;  %v169_v7 = vld [vmem:[#allocation4 + $0xd0] sm:$0xff]  ;;  %v340_v17 = vld [vmem:[#allocation4 + $0x1a8] sm:$0xff] }
  0x19   :  { %v407_v42 = vadd.f32 %v391_v23, %v351_v33  ;;  %v296_v43 = vadd.f32 %v280_v29, %v240_v34  ;;  %v208_v44 = vmax.f32 %v152_v35, %v168_v4  ;;  %v435_v49 = vmax.f32 %v379_v28, %v395_v8  ;;  %v803_v4 = vld [vmem:[#allocation4 + $0x1d8] sm:$0xff]  ;;  %v285_v23 = vld [vmem:[#allocation4 + $0x1e0] sm:$0xff]  ;;  %v396_v28 = vld [vmem:[#allocation4 + $0x1b0] sm:$0xff] }
  0x1a   :  { %v506_v48 = vmax.f32 %v431_v37, %v498_v32  ;;  %v502_v50 = vsel %vm456_vm0, %v451_v60, -inf  ;;  %v132_v52 = vadd.f32 %v116_v31, %v60_v30  ;;  %v212_v21 = vmax.f32 %v156_v45, %v172_v41  ;;  %v225_v19 = vld [vmem:[#allocation4 + $0xd8] sm:$0xff]  ;;  %v281_v35 = vld [vmem:[#allocation4 + $0xe0] sm:$0xff]  ;;  %v341_v37 = vld [vmem:[#allocation4 + $0x1e8] sm:$0xff] }
  0x1b   :  { %v474_v55 = vadd.f32 %v466_v38, %v407_v42  ;;  %v352_v56 = vadd.f32 %v336_v39, %v296_v43  ;;  %v264_v57 = vmax.f32 %v208_v44, %v224_v18  ;;  %v501_v62 = vsel %vm456_vm0, %v771_v13, -inf  ;;  %v452_v33 = vld [vmem:[#allocation4 + $0x1b8] sm:$0xff] }
  0x1c   :  { %v188_v0 = vadd.f32 %v172_v41, %v132_v52  ;;  %v133_v1 = vadd.f32 %v117_v47, %v61_v46  ;;  %v434_v60 = vmax.f32 %v378_v40, %v776_v22  ;;  %v268_v3 = vmax.f32 %v212_v21, %v228_v51  ;;  %v449_v21 = vld [vmem:[#allocation4 + $0xf8] sm:$0xff] }
  0x1d   :  { %v320_v2 = vmax.f32 %v264_v57, %v280_v29  ;;  %v153_v6 = vmax.f32 %v57_v53, %v113_v54  ;;  %v510_v8 = vmax.f32 %v435_v49, %v502_v50  ;;  %v129_v11 = vadd.f32 %v113_v54, %v57_v53  ;;  %v453_v50 = vld [vmem:[#allocation4 + $0x1f8] sm:$0xff] }
  0x1e   :  { %542 = vadd.xlane.f32.xlu1 %v478_v36  ;;  %v244_v9 = vadd.f32 %v228_v51, %v188_v0  ;;  %v189_v10 = vadd.f32 %v173_v58, %v133_v1  ;;  %v408_v14 = vadd.f32 %v392_v59, %v352_v56  ;;  %v467_v13 = vsel %vm456_vm0, %v448_v61, 0.0  ;;  %v393_v56 = vld [vmem:[#allocation4 + $0xf0] sm:$0xff] }
  0x1f   :  { %v376_v15 = vmax.f32 %v320_v2, %v336_v39  ;;  %v324_v16 = vmax.f32 %v268_v3, %v284_v63  ;;  %v209_v18 = vmax.f32 %v153_v6, %v169_v7  ;;  %v185_v20 = vadd.f32 %v169_v7, %v129_v11 }
  0x20   :  { %591 = vmax.xlane.f32.xlu2 %v506_v48  ;;  %534 = vadd.xlane.f32.xlu0 %v474_v55  ;;  %v300_v22 = vadd.f32 %v284_v63, %v244_v9  ;;  %v245_v12 = vadd.f32 %v803_v4, %v189_v10  ;;  %v509_v24 = vmax.f32 %v434_v60, %v501_v62  ;;  %v499_v36 = vsel %vm456_vm0, %v448_v61, -inf  ;;  %v397_v48 = vld [vmem:[#allocation4 + $0x1f0] sm:$0xff] }
  0x21   :  { %v380_v25 = vmax.f32 %v324_v16, %v340_v17  ;;  %v157_v26 = vmax.f32 %v61_v46, %v117_v47  ;;  %v475_v27 = vadd.f32 %v467_v13, %v408_v14  ;;  %v265_v30 = vmax.f32 %v209_v18, %v225_v19  ;;  %v337_v47 = vld [vmem:[#allocation4 + $0xe8] sm:$0xff] }
  0x22   :  { %v356_v29 = vadd.f32 %v340_v17, %v300_v22  ;;  %v241_v31 = vadd.f32 %v225_v19, %v185_v20  ;;  %v432_v32 = vmax.f32 %v376_v15, %v392_v59  ;;  %v301_v34 = vadd.f32 %v285_v23, %v245_v12 }
  0x23   :  { %v436_v38 = vmax.f32 %v380_v25, %v396_v28  ;;  %v213_v39 = vmax.f32 %v157_v26, %v173_v58  ;;  %v503_v40 = vsel %vm456_vm0, %v452_v33, -inf  ;;  %v321_v42 = vmax.f32 %v265_v30, %v281_v35 }
  0x24   :  { %v412_v41 = vadd.f32 %v396_v28, %v356_v29  ;;  %v297_v43 = vadd.f32 %v281_v35, %v241_v31  ;;  %v507_v44 = vmax.f32 %v432_v32, %v499_v36  ;;  %v471_v45 = vsel %vm456_vm0, %v452_v33, 0.0 }
  0x25   :  { %v357_v46 = vadd.f32 %v341_v37, %v301_v34  ;;  %v511_v49 = vmax.f32 %v436_v38, %v503_v40  ;;  %v377_v52 = vmax.f32 %v321_v42, %v337_v47  ;;  %v269_v54 = vmax.f32 %v213_v39, %v803_v4 }
  0x26   :  { %599 = vmax.xlane.f32.xlu1 %v510_v8  ;;  %v479_v51 = vadd.f32 %v471_v45, %v412_v41  ;;  %v353_v53 = vadd.f32 %v337_v47, %v297_v43  ;;  %v472_v57 = vsel %vm456_vm0, %v453_v50, 0.0  ;;  %v500_v63 = vsel %vm456_vm0, %v449_v21, -inf }
  0x27   :  { %v413_v55 = vadd.f32 %v397_v48, %v357_v46  ;;  %v433_v58 = vmax.f32 %v377_v52, %v393_v56  ;;  %v325_v61 = vmax.f32 %v269_v54, %v285_v23  ;;  %v468_v0 = vsel %vm456_vm0, %v449_v21, 0.0 }
  0x28   :  { %536 = vadd.xlane.f32.xlu2 %v475_v27  ;;  %597 = vmax.xlane.f32.xlu0 %v509_v24  ;;  %v409_v59 = vadd.f32 %v393_v56, %v353_v53  ;;  %v504_v4 = vsel %vm456_vm0, %v453_v50, -inf  ;;  %v557_v22 = vadd.s32 4294967288, %v769_v5  ;;  %v561_v18 = vadd.s32 4294967280, %v769_v5 }
  0x29   :  { %v480_v62 = vadd.f32 %v472_v57, %v413_v55  ;;  %v508_v1 = vmax.f32 %v433_v58, %v500_v63  ;;  %v381_v2 = vmax.f32 %v325_v61, %v341_v37  ;;  %v565_v20 = vadd.s32 4294967272, %v769_v5 }
  0x2a   :  { %v476_v60 = vadd.f32 %v468_v0, %v409_v59 }
  0x2b   :  { %v437_v3 = vmax.f32 %v381_v2, %v397_v48 }
  0x2d   :  { %v512_v6 = vmax.f32 %v437_v3, %v504_v4 }
  0x2e   :  { %593 = vmax.xlane.f32.xlu1 %v507_v44 }
  0x30   :  { %601 = vmax.xlane.f32.xlu2 %v511_v49  ;;  %544 = vadd.xlane.f32.xlu0 %v479_v51 }
  0x36   :  { %546 = vadd.xlane.f32.xlu1 %v480_v62 }
  0x38   :  { %595 = vmax.xlane.f32.xlu2 %v508_v1  ;;  %538 = vadd.xlane.f32.xlu0 %v476_v60 }
  0x40   :  { %603 = vmax.xlane.f32.xlu0 %v512_v6 }
  0x89   :  { %v541_v7 = vpop.xlane.xlu1 %540 }
  0x8a   :  { %v569_v23 = vperm.slane %v541_v7, %v769_v5 }
  0x8b   :  { %v590_v8 = vpop.xlane.xlu2 %589  ;;  %v533_v9 = vpop.xlane.xlu0 %532 }
  0x8c   :  { %v556_v30 = vperm.slane %v533_v9, %v769_v5  ;;  %v613_v41 = vperm.slane %v590_v8, %v769_v5 }
  0x91   :  { %v543_v10 = vpop.xlane.xlu1 %542 }
  0x92   :  { %v570_v24 = vperm.slane %v543_v10, %v557_v22 }
  0x93   :  { %v592_v11 = vpop.xlane.xlu2 %591  ;;  %v535_v14 = vpop.xlane.xlu0 %534 }
  0x94   :  { %v558_v26 = vperm.slane %v535_v14, %v557_v22  ;;  %v571_v31 = vsel %vm559_vm1, %v570_v24, %v569_v23  ;;  %v614_v42 = vperm.slane %v592_v11, %v557_v22 }
  0x96   :  { %v560_v34 = vsel %vm559_vm1, %v558_v26, %v556_v30  ;;  %v615_v49 = vsel %vm559_vm1, %v614_v42, %v613_v41 }
  0x99   :  { %v600_v13 = vpop.xlane.xlu1 %599 }
  0x9a   :  { %v621_v43 = vperm.slane %v600_v13, %v557_v22 }
  0x9b   :  { %v537_v15 = vpop.xlane.xlu2 %536  ;;  %v598_v16 = vpop.xlane.xlu0 %597 }
  0x9c   :  { %v562_v28 = vperm.slane %v537_v15, %v561_v18  ;;  %v620_v44 = vperm.slane %v598_v16, %v769_v5 }
  0x9e   :  { %v564_v37 = vsel %vm563_vm3, %v562_v28, %v560_v34  ;;  %v622_v50 = vsel %vm559_vm1, %v621_v43, %v620_v44 }
  0xa1   :  { %v594_v17 = vpop.xlane.xlu1 %593 }
  0xa2   :  { %v616_v45 = vperm.slane %v594_v17, %v561_v18 }
  0xa3   :  { %v545_v12 = vpop.xlane.xlu0 %544  ;;  %v602_v19 = vpop.xlane.xlu2 %601 }
  0xa4   :  { %v572_v25 = vperm.slane %v545_v12, %v561_v18  ;;  %v623_v46 = vperm.slane %v602_v19, %v561_v18  ;;  %v617_v5 = vsel %vm563_vm3, %v616_v45, %v615_v49 }
  0xa6   :  { %v573_v32 = vsel %vm563_vm3, %v572_v25, %v571_v31  ;;  %v624_v52 = vsel %vm563_vm3, %v623_v46, %v622_v50 }
  0xa9   :  { %v547_v27 = vpop.xlane.xlu1 %546 }
  0xaa   :  { %v574_v29 = vperm.slane %v547_v27, %v565_v20 }
  0xab   :  { %v539_v33 = vpop.xlane.xlu0 %538  ;;  %v596_v39 = vpop.xlane.xlu2 %595 }
  0xac   :  { %v575_v35 = vsel %vm567_vm2, %v574_v29, %v573_v32  ;;  %v566_v36 = vperm.slane %v539_v33, %v565_v20  ;;  %v618_v47 = vperm.slane %v596_v39, %v565_v20 }
  0xae   :  { %v568_v38 = vsel %vm567_vm2, %v566_v36, %v564_v37  ;;  %v619_v53 = vsel %vm567_vm2, %v618_v47, %v617_v5 }
  0xaf   :  { %v577_v40 = vsel %vm576_vm4, %v575_v35, %v568_v38 }
  0xb0   :  { %580 = vst.msk [vmem:[#allocation7] sm:$0x3] %vm579_vm5, %v577_v40 }
  0xb1   :  { %640 = dma.vmem_to_hbm [thread:$0]  %s636_s16, 32, %s638_s19, [#allocation6]  }
  0xb3   :  { %v604_v48 = vpop.xlane.xlu0 %603 }
  0xb4   :  { %v625_v51 = vperm.slane %v604_v48, %v565_v20 }
  0xb6   :  { %v626_v54 = vsel %vm567_vm2, %v625_v51, %v624_v52 }
  0xb7   :  { %v627_v55 = vsel %vm576_vm4, %v626_v54, %v619_v53 }
  0xb8   :  { %629 = vst.msk [vmem:[#allocation8] sm:$0x3] %vm579_vm5, %v627_v55 }
  0xb9   :  { %651 = dma.vmem_to_hbm [thread:$0]  %s647_s20, 32, %s649_s23, [#allocation9]  }
  0xba   :  { %742 = dma.done.wait [#allocation6], 32  }
  0xbb   :  { %743 = vsyncadd [#allocation6], 4294967264 }
  0xbc   :  { %744 = dma.done.wait [#allocation9], 32  }
  0xbd   :  { %745 = vsyncadd [#allocation9], 4294967264 }
  0xbe   :  { %660 = vsyncpa [#allocation5], 1 }
  0xbf   :  { %661 = vsyncpa [#allocation6], 1 }
  0xc0   :  { %662 = vsyncpa [#allocation9], 1 }

</bundles_post_ra>
